<compile_context>
chip_gen: v6e
topology: v6e:2x2x1
jax: 0.10.0
libtpu: 0.0.40
codegen_flags: <defaults>
</compile_context>

<pallas_src>
import jax
import jax.numpy as jnp
from jax.experimental import pallas as pl
from jax.experimental.pallas import tpu as pltpu


def _round_up(x, m):
    return (x + m - 1) // m * m


def _cdiv(a, b):
    return (a + b - 1) // b


def _vmem_capacity_bytes():
    try:
        return int(pltpu.get_tpu_info().vmem_capacity_bytes)
    except Exception:
        return 64 * 1024 * 1024  # conservative: v7x per-TensorCore VMEM


# --------------------- resident-weights kernel (small/medium eeg_dim) -------


def _mlp_resident_kernel(x_ref, w1_ref, b1_ref, w2_ref, b2_ref, o_ref):
    # x_ref:  (tm, D) f32      w1_ref: (D, D) bf16    b1_ref: (1, D) f32
    # w2_ref: (D, E)  bf16     b2_ref: (1, E) f32     o_ref:  (tm, E) f32
    x = x_ref[...].astype(jnp.bfloat16)          # in-kernel cast (VPU, hidden)
    h = jnp.dot(x, w1_ref[...], preferred_element_type=jnp.float32)
    h = jnp.maximum(h + b1_ref[...], 0.0)        # bias + ReLU in f32
    h = h.astype(jnp.bfloat16)
    y = jnp.dot(h, w2_ref[...], preferred_element_type=jnp.float32)
    o_ref[...] = (y + b2_ref[...]).astype(o_ref.dtype)


# --------------------- hidden-dim tiled kernel (large eeg_dim) --------------


def _mlp_ktiled_kernel(x_ref, w1_ref, b1_ref, w2_ref, b2_ref, o_ref, acc_ref):
    # grid = (batch tiles, hidden tiles); hidden/reduction axis is LAST.
    # x_ref:  (tm, D) f32 (block index constant across k -> resident)
    # w1_ref: (D, tk) bf16    b1_ref: (1, tk) f32
    # w2_ref: (tk, E) bf16    b2_ref: (1, E)  f32
    # o_ref:  (tm, E) f32     acc_ref: (tm, E) f32 scratch
    k = pl.program_id(1)

    @pl.when(k == 0)
    def _():
        acc_ref[...] = jnp.zeros_like(acc_ref)

    x = x_ref[...].astype(jnp.bfloat16)
    h = jnp.dot(x, w1_ref[...], preferred_element_type=jnp.float32)
    h = jnp.maximum(h + b1_ref[...], 0.0).astype(jnp.bfloat16)
    acc_ref[...] += jnp.dot(h, w2_ref[...], preferred_element_type=jnp.float32)

    @pl.when(k == pl.num_programs(1) - 1)
    def _():
        o_ref[...] = (acc_ref[...] + b2_ref[...]).astype(o_ref.dtype)


# --------------------- wrapper ----------------------------------------------


def eeg_to_embedding(x, w1, b1, w2, b2, *, tm=256, k_tile=None,
                     force_k_tiled=False):
    """Forward pass of EEGToEmbeddingModel.

    x:  (batch, eeg_dim) float32
    w1: (eeg_dim, eeg_dim)        pre-transposed (in, out); bf16 preferred
    b1: (eeg_dim,) float32
    w2: (eeg_dim, embedding_dim)  pre-transposed (in, out); bf16 preferred
    b2: (embedding_dim,) float32
    returns: (batch, embedding_dim) float32
    """
    batch, eeg_dim = x.shape
    embedding_dim = w2.shape[1]

    # Weights should already be bf16 (init_params does this once); the guard
    # below is a no-op in that case and never runs in the hot loop.
    if w1.dtype != jnp.bfloat16:
        w1 = w1.astype(jnp.bfloat16)
    if w2.dtype != jnp.bfloat16:
        w2 = w2.astype(jnp.bfloat16)
    b1_2d = b1.reshape(1, eeg_dim).astype(jnp.float32)
    b2_2d = b2.reshape(1, embedding_dim).astype(jnp.float32)

    # Row tile: multiple of 16 (bf16 sublane packing). When batch >= 32, make
    # sure the batch grid has >= 2 steps so v7x's second TensorCore is used.
    tm = max(16, _round_up(tm, 16))
    if batch < 32:
        tm_eff = _round_up(batch, 16)
    else:
        tm_eff = min(tm, _round_up(_cdiv(batch, 2), 16))
    grid_m = _cdiv(batch, tm_eff)

    phys_vmem = _vmem_capacity_bytes()

    # VMEM need of the resident-weights form: bf16 weights single-buffered,
    # f32 x / out tiles double-buffered, plus biases.
    w_bytes = 2 * eeg_dim * (eeg_dim + embedding_dim)
    io_bytes = 2 * tm_eff * (eeg_dim + embedding_dim) * 4
    resident_need = w_bytes + io_bytes + 4 * (eeg_dim + embedding_dim)

    use_k_tiled = force_k_tiled or resident_need > int(0.75 * phys_vmem)
    if use_k_tiled and not force_k_tiled:
        # K-tiled path needs a tile that divides eeg_dim; otherwise stay
        # resident (and rely on the raised VMEM limit).
        if all(eeg_dim % c for c in (1024, 512, 256, 128)):
            use_k_tiled = False

    flops = 2 * batch * eeg_dim * (eeg_dim + embedding_dim)
    bytes_accessed = (x.size * x.dtype.itemsize
                      + w1.size * 2 + w2.size * 2
                      + (eeg_dim + embedding_dim) * 4
                      + batch * embedding_dim * 4)
    cost = pl.CostEstimate(flops=flops, transcendentals=0,
                           bytes_accessed=bytes_accessed)

    out_shape = jax.ShapeDtypeStruct((batch, embedding_dim), jnp.float32)

    if not use_k_tiled:
        vmem_limit = min(int(phys_vmem * 0.85),
                         max(32 * 1024 * 1024, int(resident_need * 1.5)))
        return pl.pallas_call(
            _mlp_resident_kernel,
            out_shape=out_shape,
            grid_spec=pltpu.PrefetchScalarGridSpec(
                num_scalar_prefetch=0,
                grid=(grid_m,),
                in_specs=[
                    # Batch-tiled activations (default double-buffering).
                    pl.BlockSpec((tm_eff, eeg_dim), lambda i: (i, 0)),
                    # Grid-invariant weights/biases -> single buffer.
                    pl.BlockSpec((eeg_dim, eeg_dim), lambda i: (0, 0),
                                 pipeline_mode=pl.Buffered(1)),
                    pl.BlockSpec((1, eeg_dim), lambda i: (0, 0),
                                 pipeline_mode=pl.Buffered(1)),
                    pl.BlockSpec((eeg_dim, embedding_dim), lambda i: (0, 0),
                                 pipeline_mode=pl.Buffered(1)),
                    pl.BlockSpec((1, embedding_dim), lambda i: (0, 0),
                                 pipeline_mode=pl.Buffered(1)),
                ],
                out_specs=pl.BlockSpec((tm_eff, embedding_dim),
                                       lambda i: (i, 0)),
            ),
            compiler_params=pltpu.CompilerParams(
                dimension_semantics=("parallel",),
                vmem_limit_bytes=vmem_limit,
            ),
            cost_estimate=cost,
        )(x, w1, b1_2d, w2, b2_2d)

    # ---- K-tiled path: stream W1 columns / W2 rows, accumulate in f32 ----
    if k_tile is None:
        for cand in (1024, 512, 256, 128):
            if eeg_dim % cand == 0:
                k_tile = cand
                break
    if eeg_dim % k_tile != 0:
        raise ValueError("K-tiled path requires eeg_dim % k_tile == 0")
    grid_k = eeg_dim // k_tile

    ktiled_need = (
        2 * tm_eff * eeg_dim * 4            # x tiles (f32, double-buffered)
        + 2 * 2 * eeg_dim * k_tile          # W1 column blocks (bf16 x 2)
        + 2 * 2 * k_tile * embedding_dim    # W2 row blocks (bf16 x 2)
        + 2 * tm_eff * embedding_dim * 4    # out tiles (f32 x 2)
        + tm_eff * embedding_dim * 4        # accumulator scratch
        + 4 * (eeg_dim + embedding_dim)
    )
    vmem_limit = min(int(phys_vmem * 0.85),
                     max(32 * 1024 * 1024, int(ktiled_need * 1.5)))

    return pl.pallas_call(
        _mlp_ktiled_kernel,
        out_shape=out_shape,
        grid_spec=pltpu.PrefetchScalarGridSpec(
            num_scalar_prefetch=0,
            grid=(grid_m, grid_k),
            in_specs=[
                pl.BlockSpec((tm_eff, eeg_dim), lambda i, k: (i, 0)),
                pl.BlockSpec((eeg_dim, k_tile), lambda i, k: (0, k)),
                pl.BlockSpec((1, k_tile), lambda i, k: (0, k)),
                pl.BlockSpec((k_tile, embedding_dim), lambda i, k: (k, 0)),
                pl.BlockSpec((1, embedding_dim), lambda i, k: (0, 0),
                             pipeline_mode=pl.Buffered(1)),
            ],
            out_specs=pl.BlockSpec((tm_eff, embedding_dim),
                                   lambda i, k: (i, 0)),
            scratch_shapes=[pltpu.VMEM((tm_eff, embedding_dim), jnp.float32)],
        ),
        compiler_params=pltpu.CompilerParams(
            dimension_semantics=("parallel", "arbitrary"),
            vmem_limit_bytes=vmem_limit,
        ),
        cost_estimate=cost,
    )(x, w1, b1_2d, w2, b2_2d)


def init_params(key, eeg_dim, embedding_dim):
    """PyTorch-style Linear init, pre-transposed to (in, out). Weights are
    cast to bf16 ONCE here so the per-call wrapper never re-casts them."""
    k1, k2, k3, k4 = jax.random.split(key, 4)
    bound = 1.0 / jnp.sqrt(eeg_dim)
    w1_t = jax.random.uniform(k1, (eeg_dim, eeg_dim), jnp.float32, -bound, bound)
    b1 = jax.random.uniform(k2, (eeg_dim,), jnp.float32, -bound, bound)
    w2_t = jax.random.uniform(k3, (eeg_dim, embedding_dim), jnp.float32,
                              -bound, bound)
    b2 = jax.random.uniform(k4, (embedding_dim,), jnp.float32, -bound, bound)
    return w1_t.astype(jnp.bfloat16), b1, w2_t.astype(jnp.bfloat16), b2


if __name__ == "__main__":
    key = jax.random.PRNGKey(0)
    kx1, kp1, kx2, kp2 = jax.random.split(key, 4)

    # --- 1) resident-weights path, ragged batch (no pad / no output slice) --
    eeg_dim, embedding_dim, batch = 128, 128, 20
    x = jax.random.normal(kx1, (batch, eeg_dim), dtype=jnp.float32)
    w1, b1, w2, b2 = init_params(kp1, eeg_dim, embedding_dim)

    out = jax.block_until_ready(eeg_to_embedding(x, w1, b1, w2, b2))
    ref = (jnp.maximum(x @ w1.astype(jnp.float32) + b1, 0.0)
           @ w2.astype(jnp.float32) + b2)
    assert out.shape == (batch, embedding_dim)
    assert jnp.allclose(out, ref, atol=2e-2, rtol=2e-2), \
        float(jnp.max(jnp.abs(out - ref)))

    # --- 2) hidden-dim (K) tiled path, multi-step batch grid ---------------
    eeg_dim2, embedding_dim2, batch2 = 256, 128, 32
    x2 = jax.random.normal(kx2, (batch2, eeg_dim2), dtype=jnp.float32)
    w1b, b1b, w2b, b2b = init_params(kp2, eeg_dim2, embedding_dim2)

    out2 = jax.block_until_ready(
        eeg_to_embedding(x2, w1b, b1b, w2b, b2b, force_k_tiled=True,
                         k_tile=128))
    ref2 = (jnp.maximum(x2 @ w1b.astype(jnp.float32) + b1b, 0.0)
            @ w2b.astype(jnp.float32) + b2b)
    assert out2.shape == (batch2, embedding_dim2)
    assert jnp.allclose(out2, ref2, atol=2e-2, rtol=2e-2), \
        float(jnp.max(jnp.abs(out2 - ref2)))

    print("KERNEL_OK")
</pallas_src>

<mosaic_0001>
module attributes {stable_mosaic.version = 11 : i64} {
  func.func @_mlp_resident_kernel(%arg0: i32, %arg1: memref<32x128xf32, #tpu.memory_space<vmem>>, %arg2: memref<128x128xbf16, #tpu.memory_space<vmem>>, %arg3: memref<1x128xf32, #tpu.memory_space<vmem>>, %arg4: memref<128x128xbf16, #tpu.memory_space<vmem>>, %arg5: memref<1x128xf32, #tpu.memory_space<vmem>>, %arg6: memref<32x128xf32, #tpu.memory_space<vmem>>) attributes {dimension_semantics = [#tpu.dimension_semantics<parallel>], iteration_bounds = array<i64: 1>, scalar_prefetch = 0 : i64, scratch_operands = 0 : i64, tpu.core_type = #tpu.core_type<tc>, window_params = [{transform_indices = @transform_0, window_bounds = array<i64: 32, 128>}, {pipeline_mode = #tpu.pipeline_mode<synchronous>, transform_indices = @transform_1, window_bounds = array<i64: 128, 128>}, {pipeline_mode = #tpu.pipeline_mode<synchronous>, transform_indices = @transform_2, window_bounds = array<i64: 1, 128>}, {pipeline_mode = #tpu.pipeline_mode<synchronous>, transform_indices = @transform_3, window_bounds = array<i64: 128, 128>}, {pipeline_mode = #tpu.pipeline_mode<synchronous>, transform_indices = @transform_4, window_bounds = array<i64: 1, 128>}, {transform_indices = @transform_5, window_bounds = array<i64: 32, 128>}]} {
    %c0 = arith.constant 0 : index
    %c0_0 = arith.constant 0 : index
    %0 = vector.load %arg1[%c0, %c0_0] : memref<32x128xf32, #tpu.memory_space<vmem>>, vector<32x128xf32>
    %1 = arith.truncf %0 : vector<32x128xf32> to vector<32x128xbf16>
    %c0_1 = arith.constant 0 : index
    %c0_2 = arith.constant 0 : index
    %2 = vector.load %arg2[%c0_1, %c0_2] : memref<128x128xbf16, #tpu.memory_space<vmem>>, vector<128x128xbf16>
    %cst = arith.constant dense<0.000000e+00> : vector<32x128xf32>
    %3 = tpu.matmul %1, %2, %cst {dimension_numbers = #tpu.dot_dimension_numbers<[1], [0], [0], [1], [0, 0, 1, 1], [], []>} : vector<32x128xbf16>, vector<128x128xbf16>, vector<32x128xf32> -> vector<32x128xf32>
    %c0_3 = arith.constant 0 : index
    %c0_4 = arith.constant 0 : index
    %4 = vector.load %arg3[%c0_3, %c0_4] : memref<1x128xf32, #tpu.memory_space<vmem>>, vector<1x128xf32>
    %5 = vector.broadcast %4 : vector<1x128xf32> to vector<32x128xf32>
    %6 = arith.addf %3, %5 : vector<32x128xf32>
    %cst_5 = arith.constant 0.000000e+00 : f32
    %7 = vector.broadcast %cst_5 : f32 to vector<32x128xf32>
    %8 = arith.maximumf %6, %7 : vector<32x128xf32>
    %9 = arith.truncf %8 : vector<32x128xf32> to vector<32x128xbf16>
    %c0_6 = arith.constant 0 : index
    %c0_7 = arith.constant 0 : index
    %10 = vector.load %arg4[%c0_6, %c0_7] : memref<128x128xbf16, #tpu.memory_space<vmem>>, vector<128x128xbf16>
    %cst_8 = arith.constant dense<0.000000e+00> : vector<32x128xf32>
    %11 = tpu.matmul %9, %10, %cst_8 {dimension_numbers = #tpu.dot_dimension_numbers<[1], [0], [0], [1], [0, 0, 1, 1], [], []>} : vector<32x128xbf16>, vector<128x128xbf16>, vector<32x128xf32> -> vector<32x128xf32>
    %c0_9 = arith.constant 0 : index
    %c0_10 = arith.constant 0 : index
    %12 = vector.load %arg5[%c0_9, %c0_10] : memref<1x128xf32, #tpu.memory_space<vmem>>, vector<1x128xf32>
    %13 = vector.broadcast %12 : vector<1x128xf32> to vector<32x128xf32>
    %14 = arith.addf %11, %13 : vector<32x128xf32>
    %c0_11 = arith.constant 0 : index
    %c0_12 = arith.constant 0 : index
    %15 = vector.load %arg6[%c0_11, %c0_12] : memref<32x128xf32, #tpu.memory_space<vmem>>, vector<32x128xf32>
    tpu.vector_store %arg6[%c0_11, %c0_12], %14 {strides = array<i32>} : memref<32x128xf32, #tpu.memory_space<vmem>>, vector<32x128xf32>,
    return
  }
  func.func @transform_0(%arg0: i32) -> (i32, i32) {
    %c0_i32 = arith.constant 0 : i32
    %c0_i32_0 = arith.constant 0 : i32
    return %arg0, %c0_i32 : i32, i32
  }
  func.func @transform_1(%arg0: i32) -> (i32, i32) {
    %c0_i32 = arith.constant 0 : i32
    %c0_i32_0 = arith.constant 0 : i32
    %c0_i32_1 = arith.constant 0 : i32
    return %c0_i32, %c0_i32_0 : i32, i32
  }
  func.func @transform_2(%arg0: i32) -> (i32, i32) {
    %c0_i32 = arith.constant 0 : i32
    %c0_i32_0 = arith.constant 0 : i32
    %c0_i32_1 = arith.constant 0 : i32
    return %c0_i32, %c0_i32_0 : i32, i32
  }
  func.func @transform_3(%arg0: i32) -> (i32, i32) {
    %c0_i32 = arith.constant 0 : i32
    %c0_i32_0 = arith.constant 0 : i32
    %c0_i32_1 = arith.constant 0 : i32
    return %c0_i32, %c0_i32_0 : i32, i32
  }
  func.func @transform_4(%arg0: i32) -> (i32, i32) {
    %c0_i32 = arith.constant 0 : i32
    %c0_i32_0 = arith.constant 0 : i32
    %c0_i32_1 = arith.constant 0 : i32
    return %c0_i32, %c0_i32_0 : i32, i32
  }
  func.func @transform_5(%arg0: i32) -> (i32, i32) {
    %c0_i32 = arith.constant 0 : i32
    %c0_i32_0 = arith.constant 0 : i32
    return %arg0, %c0_i32 : i32, i32
  }
}

</mosaic_0001>

<bundles_post_ra>
// kernel: tpu_custom_call.1
= control target key start
LH: loop header
LB: loop body
LE: loop exit
PB: predicated region body
PF: predicated region fallthrough
CT: control target
= control target key end

     0   :  { %10 = vsyncpa [#allocation3], 0  ;;  %s593_s0 = inlined_call_operand.hbm [shape: f32[20,128], index: 0, kind: input, shape index: {}]   ;;  %s594_s1 = inlined_call_operand.hbm [shape: bf16[128,128], index: 1, kind: input, shape index: {}]   ;;  %s595_s2 = inlined_call_operand.vmem [shape: f32[1,128], index: 2, kind: input, shape index: {}]   ;;  %s596_s3 = inlined_call_operand.hbm [shape: bf16[128,128], index: 3, kind: input, shape index: {}]   ;;  %s597_s4 = inlined_call_operand.vmem [shape: f32[1,128], index: 4, kind: input, shape index: {}]   ;;  %s598_s5 = inlined_call_operand.hbm [shape: f32[20,128], index: 5, kind: output, shape index: {}]  }
   0x1   :  { %11 = vsyncpa [#allocation6], 0 }
   0x2   :  { %12 = vsyncpa [#allocation4], 0 }
   0x3   :  { %17 = vsyncadd [#allocation3], 128  ;;  %s525_s18 = smov [#allocation5]  }
   0x4   :  { %s30_s19 = sshll.u32 %s525_s18, 4  ;;  %s31_s19 = int_to_ptr.vmem [resolvable:$true] %s30_s19 }
   0x5   :  { %s447_s20 = scalar_lea.vmem %s31_s19, 1024  ;;  %p452_p1 = scmp.lt.s32.totalorder %s31_s19, %s31_s19 }
   0x6   :  { %p448_p0 = scmp.ne.s32.totalorder %s31_s19, %s447_s20  ;;  %p453_p2 = scmp.lt.s32.totalorder %s447_s20, %s447_s20 }
   0x8   :  { %p454_p3 = por %p453_p2, %p452_p1 }
   0xa   :  { %p455_p4 = pnand %p454_p3, %p448_p0 }
   0xc   :  { %458 = shalt.err (!%p455_p4)
}
   0xd   :  { %s526_s21 = smov 64   ;;  %s527_s22 = smov 4  }
   0xe   :  { %36 = dma.hbm_to_vmem [thread:$0]  %s594_s1, 1024, %s31_s19, [#allocation6], %s526_s21, %s526_s21, %s527_s22  }
   0xf   :  { %s528_s25 = smov [#allocation2]  }
  0x10   :  { %s18_s26 = sshll.u32 %s528_s25, 4  ;;  %s19_s26 = int_to_ptr.vmem [resolvable:$true] %s18_s26 }
  0x11   :  { %s467_s27 = scalar_lea.vmem %s19_s26, 384  ;;  %s471_s28 = scalar_lea.vmem %s19_s26, 512 }
  0x12   :  { %p468_p5 = scmp.ne.s32.totalorder %s19_s26, %s467_s27  ;;  %p472_p6 = scmp.lt.s32.totalorder %s19_s26, %s19_s26 }
  0x13   :  { %p473_p7 = scmp.lt.s32.totalorder %s471_s28, %s467_s27 }
  0x15   :  { %p474_p8 = por %p473_p7, %p472_p6 }
  0x17   :  { %p475_p9 = pnand %p474_p8, %p468_p5 }
  0x19   :  { %478 = shalt.err (!%p475_p9)
}
  0x1a   :  { %s529_s29 = smov 128   ;;  %s530_s30 = smov 8  }
  0x1b   :  { %24 = dma.hbm_to_vmem [thread:$0]  %s593_s0, 384, %s19_s26, [#allocation3], %s529_s29, %s529_s29, %s530_s30  }
  0x1c   :  { %s531_s1 = smov [#allocation7]  }
  0x1d   :  { %s44_s8 = sshll.u32 %s531_s1, 4  ;;  %s45_s8 = int_to_ptr.vmem [resolvable:$true] %s44_s8 }
  0x1e   :  { %s487_s9 = scalar_lea.vmem %s45_s8, 1024  ;;  %p492_p11 = scmp.lt.s32.totalorder %s45_s8, %s45_s8 }
  0x1f   :  { %p488_p10 = scmp.ne.s32.totalorder %s45_s8, %s487_s9  ;;  %p493_p12 = scmp.lt.s32.totalorder %s487_s9, %s487_s9 }
  0x21   :  { %p494_p13 = por %p493_p12, %p492_p11 }
  0x23   :  { %p495_p0 = pnand %p494_p13, %p488_p10 }
  0x25   :  { %498 = shalt.err (!%p495_p0)
}
  0x26   :  { %50 = dma.hbm_to_vmem [thread:$0]  %s596_s3, 1024, %s45_s8, [#allocation6], %s526_s21, %s526_s21, %s527_s22  }
  0x27   :  { %519 = dma.done.wait [#allocation3], 512  }
  0x28   :  { %520 = vsyncadd [#allocation3], 4294966784 }
  0x29   :  { %521 = dma.done.wait [#allocation6], 2048  }
  0x2a   :  { %522 = vsyncadd [#allocation6], 4294965248  ;;  %v423_v0 = vld [vmem:[#allocation5 + $0x38] sm:$0xff]   ;;  %v424_v1 = vld [vmem:[#allocation5 + $0x30] sm:$0xff]  }
  0x2b   :  { %375 = vmatprep.subr.bf16.mxu0 %v423_v0  ;;  %v425_v2 = vld [vmem:[#allocation5 + $0x28] sm:$0xff]   ;;  %v426_v3 = vld [vmem:[#allocation5 + $0x20] sm:$0xff]   ;;  %v431_v7 = vld [vmem:[#allocation7 + $0x38] sm:$0xff]  }
  0x2c   :  { %376 = vmatpush3.bf16.msra.mxu0 %v423_v0  ;;  %v63_v4 = vld [vmem:[#allocation2] sm:$0xff]  ;;  %v64_v5 = vld [vmem:[#allocation2 + $0x8] sm:$0xff]  ;;  %v432_v8 = vld [vmem:[#allocation7 + $0x30] sm:$0xff]   ;;  %395 = vmatprep.subr.bf16.mxu1 %v431_v7 }
  0x2d   :  { %377 = vmatprep.subr.bf16.mxu0 %v424_v1  ;;  %v67_v6 = vpack.c.bf16 %v64_v5, %v63_v4  ;;  %v427_v9 = vld [vmem:[#allocation5 + $0x18] sm:$0xff]   ;;  %396 = vmatpush3.bf16.msra.mxu1 %v431_v7  ;;  %v433_v10 = vld [vmem:[#allocation7 + $0x28] sm:$0xff]   ;;  %v428_v11 = vld [vmem:[#allocation5 + $0x10] sm:$0xff]  }
  0x2e   :  { %397 = vmatprep.subr.bf16.mxu1 %v432_v8  ;;  %v434_v12 = vld [vmem:[#allocation7 + $0x20] sm:$0xff]   ;;  %v429_v13 = vld [vmem:[#allocation5 + $0x8] sm:$0xff]   ;;  %v435_v14 = vld [vmem:[#allocation7 + $0x18] sm:$0xff]  }
  0x2f   :  { %391 = vmatprep.mubr.bf16.mxu0 %v67_v6  ;;  %v430_v15 = vld [vmem:[#allocation5] sm:$0xff]   ;;  %v65_v16 = vld [vmem:[#allocation2 + $0x10] sm:$0xff]  ;;  %v66_v17 = vld [vmem:[#allocation2 + $0x18] sm:$0xff] }
  0x30   :  { %378 = vmatpush3.bf16.msra.mxu0 %v424_v1  ;;  %v68_v18 = vpack.c.bf16 %v66_v17, %v65_v16  ;;  %v436_v19 = vld [vmem:[#allocation7 + $0x10] sm:$0xff]   ;;  %v437_v20 = vld [vmem:[#allocation7 + $0x8] sm:$0xff]   ;;  %v438_v21 = vld [vmem:[#allocation7] sm:$0xff]  }
  0x31   :  { %379 = vmatprep.subr.bf16.mxu0 %v425_v2  ;;  %398 = vmatpush3.bf16.msra.mxu1 %v432_v8  ;;  %v337_v24 = vld [vmem:[%s595_s2] ss:$0 sm:$0xff] }
  0x32   :  { %399 = vmatprep.subr.bf16.mxu1 %v433_v10  ;;  %v346_v37 = vld [vmem:[%s597_s4] ss:$0 sm:$0xff] }
  0x34   :  { %380 = vmatpush3.bf16.msra.mxu0 %v425_v2 }
  0x35   :  { %381 = vmatprep.subr.bf16.mxu0 %v426_v3  ;;  %400 = vmatpush3.bf16.msra.mxu1 %v433_v10 }
  0x36   :  { %401 = vmatprep.subr.bf16.mxu1 %v434_v12 }
  0x38   :  { %382 = vmatpush3.bf16.msra.mxu0 %v426_v3 }
  0x39   :  { %383 = vmatprep.subr.bf16.mxu0 %v427_v9  ;;  %402 = vmatpush3.bf16.msra.mxu1 %v434_v12 }
  0x3a   :  { %403 = vmatprep.subr.bf16.mxu1 %v435_v14 }
  0x3c   :  { %384 = vmatpush3.bf16.msra.mxu0 %v427_v9 }
  0x3d   :  { %385 = vmatprep.subr.bf16.mxu0 %v428_v11  ;;  %404 = vmatpush3.bf16.msra.mxu1 %v435_v14 }
  0x3e   :  { %405 = vmatprep.subr.bf16.mxu1 %v436_v19 }
  0x40   :  { %386 = vmatpush3.bf16.msra.mxu0 %v428_v11 }
  0x41   :  { %387 = vmatprep.subr.bf16.mxu0 %v429_v13  ;;  %406 = vmatpush3.bf16.msra.mxu1 %v436_v19 }
  0x42   :  { %407 = vmatprep.subr.bf16.mxu1 %v437_v20 }
  0x44   :  { %388 = vmatpush3.bf16.msra.mxu0 %v429_v13 }
  0x45   :  { %389 = vmatprep.subr.bf16.mxu0 %v430_v15  ;;  %408 = vmatpush3.bf16.msra.mxu1 %v437_v20 }
  0x46   :  { %409 = vmatprep.subr.bf16.mxu1 %v438_v21 }
  0x48   :  { %390 = vmatpush3.bf16.msra.mxu0 %v430_v15 }
  0x49   :  { %410 = vmatpush3.bf16.msra.mxu1 %v438_v21 }
  0x4b   :  { %392 = vmatmul.mubr.bf16.vlgmr.msra.gmra.mxu0 %v68_v18 }
 0x10b   :  { %v393_v22 = vpop.f32.mrf.mxu0 }
 0x10c   :  { %v183_v28 = vadd.f32 %v393_v22, %v337_v24 }
 0x10d   :  { %v174_v23 = vpop.f32.mrf.mxu0 }
 0x10e   :  { %v175_v26 = vadd.f32 %v337_v24, %v174_v23  ;;  %v191_v34 = vmax.f32 %v183_v28, 0.0 }
 0x10f   :  { %v394_v25 = vpop.f32.mrf.mxu0 }
 0x110   :  { %v186_v27 = vadd.f32 %v394_v25, %v337_v24  ;;  %v189_v32 = vmax.f32 %v175_v26, 0.0 }
 0x111   :  { %v177_v29 = vpop.f32.mrf.mxu0 }
 0x112   :  { %v178_v30 = vadd.f32 %v337_v24, %v177_v29  ;;  %v192_v31 = vmax.f32 %v186_v27, 0.0 }
 0x114   :  { %v190_v33 = vmax.f32 %v178_v30, 0.0  ;;  %v194_v36 = vpack.c.bf16 %v192_v31, %v191_v34 }
 0x116   :  { %v193_v35 = vpack.c.bf16 %v190_v33, %v189_v32 }
 0x118   :  { %411 = vmatprep.mubr.bf16.mxu1 %v193_v35 }
 0x119   :  { %412 = vmatmul.mubr.bf16.vlgmr.msra.gmra.mxu1 %v194_v36 }
 0x1d9   :  { %v413_v38 = vpop.f32.mrf.mxu1 }
 0x1da   :  { %v309_v39 = vadd.f32 %v413_v38, %v346_v37 }
 0x1db   :  { %v300_v40 = vpop.f32.mrf.mxu1 }
 0x1dc   :  { %317 = vst [vmem:[#allocation8 + $0x10] sm:$0xff] %v309_v39  ;;  %v301_v41 = vadd.f32 %v346_v37, %v300_v40 }
 0x1dd   :  { %v414_v42 = vpop.f32.mrf.mxu1 }
 0x1de   :  { %315 = vst [vmem:[#allocation8] sm:$0xff] %v301_v41  ;;  %v312_v43 = vadd.f32 %v414_v42, %v346_v37 }
 0x1df   :  { %v303_v44 = vpop.f32.mrf.mxu1 }
 0x1e0   :  { %318 = vst [vmem:[#allocation8 + $0x18] sm:$0xff] %v312_v43  ;;  %v304_v45 = vadd.f32 %v346_v37, %v303_v44 }
 0x1e2   :  { %316 = vst [vmem:[#allocation8 + $0x8] sm:$0xff] %v304_v45 }
 0x1e3   :  { %323 = vsyncadd [#allocation4], 128  ;;  %s532_s2 = smov [#allocation8]  }
 0x1e4   :  { %s324_s14 = sshll.u32 %s532_s2, 4  ;;  %s325_s14 = int_to_ptr.vmem [resolvable:$true] %s324_s14 }
 0x1e5   :  { %s499_s15 = scalar_lea.vmem %s325_s14, 384  ;;  %s503_s16 = scalar_lea.vmem %s325_s14, 512 }
 0x1e6   :  { %p500_p1 = scmp.ne.s32.totalorder %s325_s14, %s499_s15  ;;  %p504_p2 = scmp.lt.s32.totalorder %s325_s14, %s325_s14 }
 0x1e7   :  { %p505_p3 = scmp.lt.s32.totalorder %s503_s16, %s499_s15 }
 0x1e9   :  { %p506_p4 = por %p505_p3, %p504_p2 }
 0x1eb   :  { %p507_p5 = pnand %p506_p4, %p500_p1 }
 0x1ed   :  { %510 = shalt.err (!%p507_p5)
}
 0x1ee   :  { %330 = dma.vmem_to_hbm [thread:$0]  %s325_s14, 384, %s598_s5, [#allocation4], %s529_s29, %s529_s29, %s530_s30  }
 0x1ef   :  { %523 = dma.done.wait [#allocation4], 512  }
 0x1f0   :  { %524 = vsyncadd [#allocation4], 4294966784 }
 0x1f1   :  { %334 = vsyncpa [#allocation3], 1 }
 0x1f2   :  { %335 = vsyncpa [#allocation6], 1 }
 0x1f3   :  { %336 = vsyncpa [#allocation4], 1 }

</bundles_post_ra>
